<compile_context>
chip_gen: v6e
topology: v6e:2x2x1
jax: 0.10.0
libtpu: 0.0.40
codegen_flags: <defaults>
</compile_context>

<pallas_src>
import jax
import jax.numpy as jnp
from jax.experimental import pallas as pl
from jax.experimental.pallas import tpu as pltpu


def _round_up(x: int, m: int) -> int:
    return (x + m - 1) // m * m


def mlm_head_kernel(x_ref, w_ref, b_ref, labels_ref,
                    logits_ref, nll_ref, valid_ref):
    # x_ref:      (TILE_M, H) bf16   per-tile activations (pipelined)
    # w_ref:      (H, V)      bf16   VMEM-resident across all tiles
    # b_ref:      (1, V)      f32    VMEM-resident
    # labels_ref: (TILE_M, 1) int32  (-100 == ignore)
    # logits_ref: (TILE_M, V) f32
    # nll_ref:    (TILE_M, 1) f32    masked per-token nll (0 where ignored)
    # valid_ref:  (TILE_M, 1) f32    1.0 where label != -100
    logits = jnp.dot(x_ref[...], w_ref[...],
                     preferred_element_type=jnp.float32) + b_ref[...]
    logits_ref[...] = logits

    labels = labels_ref[...]                                         # (TILE_M, 1)
    m = jnp.max(logits, axis=-1, keepdims=True)                      # (TILE_M, 1)
    lse = jnp.log(jnp.sum(jnp.exp(logits - m), axis=-1, keepdims=True)) + m

    vocab_ids = jax.lax.broadcasted_iota(jnp.int32, logits.shape, 1)  # (TILE_M, V)
    target_logit = jnp.sum(jnp.where(vocab_ids == labels, logits, 0.0),
                           axis=-1, keepdims=True)                    # (TILE_M, 1)

    valid = (labels != -100).astype(jnp.float32)                      # (TILE_M, 1)
    nll_ref[...] = (lse - target_logit) * valid
    valid_ref[...] = valid


def mlm_head_forward(encoder_output, weight, bias, labels=None,
                     attention_mask=None, *, tile_m=256):
    """encoder_output: (B, S, H) f32
       weight:         (V, H) f32  (PyTorch nn.Linear layout)
       bias:           (V,)   f32
       labels:         (B, S) int32 with -100 for non-masked tokens (or None)
       Returns (loss scalar or None, logits (B, S, V) f32)."""
    del attention_mask  # unused by the reference module
    B, S, H = encoder_output.shape
    V = weight.shape[0]
    N = B * S

    # Token-tile size: multiple of 8 (sublane), capped at (padded) N.
    tile_m = max(8, _round_up(min(tile_m, _round_up(N, 8)), 8))
    n_pad = _round_up(N, tile_m)
    num_tiles = n_pad // tile_m

    x = encoder_output.reshape(N, H).astype(jnp.float32)
    if labels is None:
        labels2d = jnp.full((N, 1), -100, dtype=jnp.int32)
    else:
        labels2d = labels.reshape(N, 1).astype(jnp.int32)
    if n_pad != N:
        x = jnp.pad(x, ((0, n_pad - N), (0, 0)))
        labels2d = jnp.pad(labels2d, ((0, n_pad - N), (0, 0)),
                           constant_values=-100)

    x_bf16 = x.astype(jnp.bfloat16)                     # halves x HBM traffic
    w_t = weight.T.astype(jnp.bfloat16)                 # (H, V), bf16 for MXU
    bias2d = bias.reshape(1, V).astype(jnp.float32)

    # VMEM budget: resident weight/bias + double-buffered tiles + slack.
    vmem_bytes = (H * V * 2 + V * 4
                  + 2 * tile_m * H * 2        # x tiles (bf16)
                  + 2 * tile_m * V * 4        # logits tiles (f32)
                  + 2 * tile_m * 4            # label tiles
                  + 4 * tile_m * 4            # nll/valid tiles
                  + (4 << 20))
    vmem_limit = int(min(max(vmem_bytes, 32 << 20), 100 << 20))

    cost = pl.CostEstimate(
        flops=2 * n_pad * H * V,
        transcendentals=n_pad * V,
        bytes_accessed=(n_pad * H * 2 + H * V * 2 + V * 4 + n_pad * 4
                        + n_pad * V * 4 + 2 * n_pad * 4),
    )

    logits, nll, valid = pl.pallas_call(
        mlm_head_kernel,
        out_shape=(
            jax.ShapeDtypeStruct((n_pad, V), jnp.float32),
            jax.ShapeDtypeStruct((n_pad, 1), jnp.float32),
            jax.ShapeDtypeStruct((n_pad, 1), jnp.float32),
        ),
        grid=(num_tiles,),
        in_specs=[
            pl.BlockSpec((tile_m, H), lambda i: (i, 0)),   # x (pipelined)
            pl.BlockSpec((H, V), lambda i: (0, 0)),        # weight (resident)
            pl.BlockSpec((1, V), lambda i: (0, 0)),        # bias (resident)
            pl.BlockSpec((tile_m, 1), lambda i: (i, 0)),   # labels
        ],
        out_specs=(
            pl.BlockSpec((tile_m, V), lambda i: (i, 0)),   # logits
            pl.BlockSpec((tile_m, 1), lambda i: (i, 0)),   # per-token nll
            pl.BlockSpec((tile_m, 1), lambda i: (i, 0)),   # valid flags
        ),
        compiler_params=pltpu.CompilerParams(
            dimension_semantics=("parallel",),
            vmem_limit_bytes=vmem_limit,
        ),
        cost_estimate=cost,
    )(x_bf16, w_t, bias2d, labels2d)

    logits = logits[:N].reshape(B, S, V)
    if labels is None:
        return None, logits
    # Masked mean over non-ignored tokens (padded rows contribute 0 / 0).
    loss = jnp.sum(nll) / jnp.sum(valid)
    return loss, logits


if __name__ == "__main__":
    # Small config: batch=2, seq=8, hidden=32, vocab=256
    B, S, H, V = 2, 8, 32, 256

    key = jax.random.PRNGKey(0)
    k_x, k_w, k_b, k_lab, k_mask = jax.random.split(key, 5)

    encoder_output = jax.random.normal(k_x, (B, S, H), dtype=jnp.float32)
    # nn.Linear(hidden_size, vocab_size): weight (V, H), bias (V,)
    weight = jax.random.normal(k_w, (V, H), dtype=jnp.float32) * 0.02
    bias = jax.random.normal(k_b, (V,), dtype=jnp.float32) * 0.02

    # labels with -100 on ~half the positions (non-masked tokens)
    raw_labels = jax.random.randint(k_lab, (B, S), 0, V, dtype=jnp.int32)
    mask = jax.random.bernoulli(k_mask, 0.5, (B, S))
    labels = jnp.where(mask, raw_labels, jnp.full_like(raw_labels, -100))

    # tile_m=8 so the toy N=16 actually exercises a multi-tile grid.
    loss, logits = mlm_head_forward(encoder_output, weight, bias, labels,
                                    tile_m=8)
    jax.block_until_ready((loss, logits))

    # ---- references ----------------------------------------------------
    def masked_ce(lg, lab):
        logp = jax.nn.log_softmax(lg, axis=-1)
        safe = jnp.where(lab == -100, 0, lab)
        nll = -jnp.take_along_axis(logp, safe[..., None], axis=-1)[..., 0]
        v = (lab != -100).astype(jnp.float32)
        return jnp.sum(nll * v) / jnp.sum(v)

    # Reference with bf16-rounded MXU inputs + f32 accumulation (tight check).
    x_bf = encoder_output.astype(jnp.bfloat16).astype(jnp.float32)
    w_bf = weight.T.astype(jnp.bfloat16).astype(jnp.float32)
    ref_logits_bf = (x_bf.reshape(-1, H) @ w_bf).reshape(B, S, V) + bias
    ref_loss_bf = masked_ce(ref_logits_bf, labels)

    # Full f32 reference (module semantics, looser tolerance).
    ref_logits_f32 = encoder_output @ weight.T + bias
    ref_loss_f32 = masked_ce(ref_logits_f32, labels)

    assert jnp.allclose(logits, ref_logits_bf, atol=1e-3, rtol=1e-3)
    assert jnp.allclose(loss, ref_loss_bf, atol=1e-4, rtol=1e-4)
    assert jnp.allclose(logits, ref_logits_f32, atol=3e-2, rtol=3e-2)
    assert jnp.allclose(loss, ref_loss_f32, atol=2e-2, rtol=2e-2)

    print("KERNEL_OK")
</pallas_src>

<mosaic_0001>
module attributes {stable_mosaic.version = 11 : i64} {
  func.func @mlm_head_kernel(%arg0: i32, %arg1: memref<8x32xbf16, #tpu.memory_space<vmem>>, %arg2: memref<32x256xbf16, #tpu.memory_space<vmem>>, %arg3: memref<1x256xf32, #tpu.memory_space<vmem>>, %arg4: memref<8x1xi32, #tpu.memory_space<vmem>>, %arg5: memref<8x256xf32, #tpu.memory_space<vmem>>, %arg6: memref<8x1xf32, #tpu.memory_space<vmem>>, %arg7: memref<8x1xf32, #tpu.memory_space<vmem>>) attributes {dimension_semantics = [#tpu.dimension_semantics<parallel>], iteration_bounds = array<i64: 2>, scalar_prefetch = 0 : i64, scratch_operands = 0 : i64, tpu.core_type = #tpu.core_type<tc>, window_params = [{transform_indices = @transform_0, window_bounds = array<i64: 8, 32>}, {pipeline_mode = #tpu.pipeline_mode<synchronous>, transform_indices = @transform_1, window_bounds = array<i64: 32, 256>}, {pipeline_mode = #tpu.pipeline_mode<synchronous>, transform_indices = @transform_2, window_bounds = array<i64: 1, 256>}, {transform_indices = @transform_3, window_bounds = array<i64: 8, 1>}, {transform_indices = @transform_4, window_bounds = array<i64: 8, 256>}, {transform_indices = @transform_5, window_bounds = array<i64: 8, 1>}, {transform_indices = @transform_6, window_bounds = array<i64: 8, 1>}]} {
    %c0 = arith.constant 0 : index
    %c0_0 = arith.constant 0 : index
    %0 = vector.load %arg1[%c0, %c0_0] : memref<8x32xbf16, #tpu.memory_space<vmem>>, vector<8x32xbf16>
    %c0_1 = arith.constant 0 : index
    %c0_2 = arith.constant 0 : index
    %1 = vector.load %arg2[%c0_1, %c0_2] : memref<32x256xbf16, #tpu.memory_space<vmem>>, vector<32x256xbf16>
    %cst = arith.constant dense<0.000000e+00> : vector<8x256xf32>
    %2 = tpu.matmul %0, %1, %cst {dimension_numbers = #tpu.dot_dimension_numbers<[1], [0], [0], [1], [0, 0, 1, 1], [], []>} : vector<8x32xbf16>, vector<32x256xbf16>, vector<8x256xf32> -> vector<8x256xf32>
    %c0_3 = arith.constant 0 : index
    %c0_4 = arith.constant 0 : index
    %3 = vector.load %arg3[%c0_3, %c0_4] : memref<1x256xf32, #tpu.memory_space<vmem>>, vector<1x256xf32>
    %4 = vector.broadcast %3 : vector<1x256xf32> to vector<8x256xf32>
    %5 = arith.addf %2, %4 : vector<8x256xf32>
    %c0_5 = arith.constant 0 : index
    %c0_6 = arith.constant 0 : index
    %6 = vector.load %arg5[%c0_5, %c0_6] : memref<8x256xf32, #tpu.memory_space<vmem>>, vector<8x256xf32>
    tpu.vector_store %arg5[%c0_5, %c0_6], %5 {strides = array<i32>} : memref<8x256xf32, #tpu.memory_space<vmem>>, vector<8x256xf32>,
    %c0_7 = arith.constant 0 : index
    %c0_8 = arith.constant 0 : index
    %7 = vector.load %arg4[%c0_7, %c0_8] : memref<8x1xi32, #tpu.memory_space<vmem>>, vector<8x1xi32>
    %cst_9 = arith.constant dense<0xFF800000> : vector<8xf32>
    %8 = vector.multi_reduction <maximumf>, %5, %cst_9 [1] : vector<8x256xf32> to vector<8xf32>
    %9 = vector.shape_cast %8 : vector<8xf32> to vector<8x1xf32>
    %10 = vector.broadcast %9 : vector<8x1xf32> to vector<8x256xf32>
    %11 = arith.subf %5, %10 : vector<8x256xf32>
    %12 = math.exp %11 : vector<8x256xf32>
    %cst_10 = arith.constant dense<0.000000e+00> : vector<8xf32>
    %13 = vector.multi_reduction <add>, %12, %cst_10 [1] : vector<8x256xf32> to vector<8xf32>
    %14 = vector.shape_cast %13 : vector<8xf32> to vector<8x1xf32>
    %15 = math.log %14 : vector<8x1xf32>
    %16 = arith.addf %15, %9 : vector<8x1xf32>
    %17 = tpu.iota {dimensions = array<i32: 1>} : vector<8x256xi32>
    %18 = vector.broadcast %7 : vector<8x1xi32> to vector<8x256xi32>
    %19 = arith.cmpi eq, %17, %18 : vector<8x256xi32>
    %cst_11 = arith.constant 0.000000e+00 : f32
    %20 = vector.broadcast %cst_11 : f32 to vector<8x256xf32>
    %21 = arith.select %19, %5, %20 : vector<8x256xi1>, vector<8x256xf32>
    %cst_12 = arith.constant dense<0.000000e+00> : vector<8xf32>
    %22 = vector.multi_reduction <add>, %21, %cst_12 [1] : vector<8x256xf32> to vector<8xf32>
    %23 = vector.shape_cast %22 : vector<8xf32> to vector<8x1xf32>
    %c-100_i32 = arith.constant -100 : i32
    %24 = vector.broadcast %c-100_i32 : i32 to vector<8x1xi32>
    %25 = arith.cmpi ne, %7, %24 : vector<8x1xi32>
    %26 = arith.extui %25 : vector<8x1xi1> to vector<8x1xi32>
    %27 = arith.sitofp %26 : vector<8x1xi32> to vector<8x1xf32>
    %28 = arith.subf %16, %23 : vector<8x1xf32>
    %29 = arith.mulf %28, %27 : vector<8x1xf32>
    %c0_13 = arith.constant 0 : index
    %c0_14 = arith.constant 0 : index
    %30 = vector.load %arg6[%c0_13, %c0_14] : memref<8x1xf32, #tpu.memory_space<vmem>>, vector<8x1xf32>
    tpu.vector_store %arg6[%c0_13, %c0_14], %29 {strides = array<i32>} : memref<8x1xf32, #tpu.memory_space<vmem>>, vector<8x1xf32>,
    %c0_15 = arith.constant 0 : index
    %c0_16 = arith.constant 0 : index
    %31 = vector.load %arg7[%c0_15, %c0_16] : memref<8x1xf32, #tpu.memory_space<vmem>>, vector<8x1xf32>
    tpu.vector_store %arg7[%c0_15, %c0_16], %27 {strides = array<i32>} : memref<8x1xf32, #tpu.memory_space<vmem>>, vector<8x1xf32>,
    return
  }
  func.func @transform_0(%arg0: i32) -> (i32, i32) {
    %c0_i32 = arith.constant 0 : i32
    %c0_i32_0 = arith.constant 0 : i32
    return %arg0, %c0_i32 : i32, i32
  }
  func.func @transform_1(%arg0: i32) -> (i32, i32) {
    %c0_i32 = arith.constant 0 : i32
    %c0_i32_0 = arith.constant 0 : i32
    %c0_i32_1 = arith.constant 0 : i32
    return %c0_i32, %c0_i32_0 : i32, i32
  }
  func.func @transform_2(%arg0: i32) -> (i32, i32) {
    %c0_i32 = arith.constant 0 : i32
    %c0_i32_0 = arith.constant 0 : i32
    %c0_i32_1 = arith.constant 0 : i32
    return %c0_i32, %c0_i32_0 : i32, i32
  }
  func.func @transform_3(%arg0: i32) -> (i32, i32) {
    %c0_i32 = arith.constant 0 : i32
    %c0_i32_0 = arith.constant 0 : i32
    return %arg0, %c0_i32 : i32, i32
  }
  func.func @transform_4(%arg0: i32) -> (i32, i32) {
    %c0_i32 = arith.constant 0 : i32
    %c0_i32_0 = arith.constant 0 : i32
    return %arg0, %c0_i32 : i32, i32
  }
  func.func @transform_5(%arg0: i32) -> (i32, i32) {
    %c0_i32 = arith.constant 0 : i32
    %c0_i32_0 = arith.constant 0 : i32
    return %arg0, %c0_i32 : i32, i32
  }
  func.func @transform_6(%arg0: i32) -> (i32, i32) {
    %c0_i32 = arith.constant 0 : i32
    %c0_i32_0 = arith.constant 0 : i32
    return %arg0, %c0_i32 : i32, i32
  }
}

</mosaic_0001>

<bundles_post_ra>
// kernel: tpu_custom_call.1
= control target key start
LH: loop header
LB: loop body
LE: loop exit
PB: predicated region body
PF: predicated region fallthrough
CT: control target
= control target key end

     0   :  { %12 = vsyncpa [#allocation3], 0  ;;  %s942_s0 = inlined_call_operand.vmem [shape: bf16[16,32], index: 0, kind: input, shape index: {}]   ;;  %s943_s1 = inlined_call_operand.hbm [shape: bf16[32,256], index: 1, kind: input, shape index: {}]   ;;  %s944_s2 = inlined_call_operand.vmem [shape: f32[1,256], index: 2, kind: input, shape index: {}]   ;;  %s945_s3 = inlined_call_operand.vmem [shape: s32[16,1], index: 3, kind: input, shape index: {}]   ;;  %s946_s4 = inlined_call_operand.hbm [shape: f32[16,256], index: 4, kind: output, shape index: {0}]   ;;  %s947_s5 = inlined_call_operand.vmem [shape: f32[16,1], index: 5, kind: output, shape index: {1}]   ;;  %s948_s6 = inlined_call_operand.vmem [shape: f32[16,1], index: 6, kind: output, shape index: {2}]  }
   0x1   :  { %13 = vsyncpa [#allocation4], 0 }
   0x2   :  { %15 = vsyncpa [#allocation4 + $0x1], 0  ;;  %s805_s21 = smov 0   ;;  %s807_s22 = smov 0  }
   0x3   :  { %s809_s23 = smov 0   ;;  %s811_s24 = smov 0  }
   0x4 LB: > { %s826_s25 = sadd.s32 4294967295, %s762_s24   ;;  %s582_s26 = sadd.s32 4294967294, %s762_s24   ;;  %s762_s24 = sphi %s811_s24, %s956_s24   ;;  %s758_s23 = sphi %s809_s23, %s955_s23   ;;  %s754_s22 = sphi %s807_s22, %s954_s22   ;;  %s750_s21 = sphi %s805_s21, %s953_s21  }
   0x5   : > { %s830_s27 = sadd.s32 1, %s762_s24   ;;  %s122_s28 = sadd.s32 1, %s758_s23 }
   0x6   : > { %s119_s29 = ssub.s32 %s762_s24, %s830_s27  ;;  %p132_p0 = scmp.ne.s32.totalorder %s758_s23, %s754_s22 }
   0x7   : > { %p120_p1 = scmp.eq.s32.totalorder %s119_s29, 0  ;;  %p133_p2 = scmp.eq.s32.totalorder %s826_s25, 1 }
   0x8   : > { %p138_p3 = scmp.ne.s32.totalorder %s754_s22, %s750_s21  ;;  %p139_p4 = scmp.eq.s32.totalorder %s582_s26, 1 }
   0x9   : > { %s841_s30 = scalar_select %p120_p1, %s758_s23, %s122_s28  }
   0xa   : > { %p843_p5 = por %p133_p2, %p132_p0  ;;  %p847_p6 = por %p139_p4, %p138_p3 }
   0xb   : > { %p583_p7 = scmp.ge.s32.totalorder %s762_s24, 1  ;;  %p198_p8 = scmp.lt.s32.totalorder %s762_s24, 3 }
   0xc   : > { %s950_s8 = scalar_select %p847_p6, 1, 0 }
   0xd   : > { %p619_p9 = scmp.eq.s32.totalorder %s826_s25, 0  ;;  %p854_p10 = pnand %p583_p7, %p198_p8 }
   0xe   : > { %s764_s10 = smov [#allocation2]  }
   0xf   : > { %s210_s11 = sshll.u32 %s764_s10, 4  ;;  %p611_p11 = pneg %p854_p10  ;;  %s211_s11 = int_to_ptr.vmem [resolvable:$true] %s210_s11 }
  0x10   : > { %s683_s12 = scalar_lea.vmem %s211_s11, 512  ;;  %p691_p3 = scmp.lt.s32.totalorder %s211_s11, %s211_s11 }
  0x11   : > { %p612_p12 = pnand %p619_p9, %p611_p11  ;;  %p684_p0 = scmp.ne.s32.totalorder %s211_s11, %s683_s12 }
  0x12   : > { %p692_p4 = scmp.lt.s32.totalorder %s683_s12, %s683_s12 }
  0x13   : > { %p674_p13 = pneg %p612_p12 }
  0x14   : > { %p693_p6 = por %p692_p4, %p691_p3 }
  0x15   : > { %p686_p1 = pnand %p684_p0, %p674_p13 }
  0x17   : > { %p687_p2 = pneg %p686_p1 }
  0x19   : > { %p694_p7 = pnand %p693_p6, %p687_p2 }
  0x1b   : > { %697 = shalt.err (!%p694_p7)
}
  0x1c   : > { %s765_s13 = smov 128   ;;  %s766_s14 = smov 8  }
  0x1d   : > { %614 = dma.hbm_to_vmem [thread:$0]  (!%p612_p12), %s943_s1, 512, %s211_s11, [#allocation3], %s765_s13, %s765_s13, %s766_s14  }
  0x1e   : > { %243 = sbr.rel (%p854_p10) target bundleno = 565 (0x235), region = 36 }
  0x23   : > { %741 = dma.done.wait (%p619_p9), [#allocation3], 512  }
  0x24   : > { %743 = vsyncadd (%p619_p9), [#allocation3], 4294966784  ;;  %p284_p8 = scmp.lt.s32.totalorder %s826_s25, 1  ;;  %v767_v0 = vmov 0   ;;  %v660_v1 = vld [vmem:[#allocation2 + $0x14] ss:$8 sps:$4 sm:$0xff]   ;;  %v308_v6 = vlaneseq }
  0x25   : > { %374 = vmatprep.mubr.bf16.mxu0 %v767_v0  ;;  %659 = vset.pattern.permute.xlu0 %v767_v0  ;;  %v662_v2 = vld [vmem:[#allocation2 + $0x10] ss:$8 sps:$4 sm:$0xff]   ;;  %v663_v3 = vld [vmem:[#allocation2 + $0x4] ss:$8 sps:$4 sm:$0xff]   ;;  %v665_v4 = vld [vmem:[#allocation2] ss:$8 sps:$4 sm:$0xff]  }
  0x26   : > { %s873_s17 = scalar_select %p284_p8, %s826_s25, 1  ;;  %354 = vmatprep.subr.bf16.mxu0 %v660_v1  ;;  %vm338_vm0 = vcmask 261120   ;;  %v309_v7 = vshrl.u32 %v308_v6, 7  ;;  %v306_v9 = vld [vmem:[%s944_s2] sm:$0x3]  ;;  %v402_v26 = vand.u32 127, %v308_v6 }
  0x27   : > { %355 = vmatpush1.bf16.msra.mxu0 %v662_v2  ;;  %s269_s9 = sand.u32 1, %s754_s22   ;;  %vm419_vm4 = vcmask 7168   ;;  %v768_v35 = vmov 0.0   ;;  %s604_s19 = sshll.u32 %s826_s25, 8 }
  0x28   : > { %s589_s18 = sshll.u32 %s873_s17, 2  ;;  %356 = vmatprep.subr.bf16.mxu0 %v663_v3  ;;  %v310_v8 = vsub.s32 0, %v309_v7  ;;  %v314_v10 = vsub.s32 1, %v309_v7  ;;  %s588_s10 = sshll.u32 %s269_s9, 4  ;;  %v403_v27 = vadd.s32 128, %v402_v26 }
  0x29   : > { %s287_s26 = scalar_lea.vmem %s942_s0, %s589_s18  ;;  %s885_s11 = scalar_lea.vmem [#allocation5], %s588_s10 }
  0x2a   : > { %v301_v5 = vld [vmem:[%s287_s26] sm:$0xf]  ;;  %v311_v11 = vrot.slane %v306_v9, %v310_v8  ;;  %v315_v12 = vrot.slane %v306_v9, %v314_v10  ;;  %s890_s12 = sshll.u32 %s873_s17, 3  ;;  %s445_s20 = sshll.u32 %s885_s11, 4  ;;  %s446_s20 = int_to_ptr.vmem [resolvable:$true] %s445_s20 }
  0x2b   : > { %357 = vmatpush1.bf16.msra.mxu0 %v665_v4  ;;  %s291_s15 = scalar_lea.vmem %s945_s3, %s890_s12  ;;  %s299_s18 = scalar_lea.vmem %s948_s6, %s890_s12 }
  0x2c   : > { %v385_v20 = vld [vmem:[%s291_s15] sm:$0xff]  ;;  %s443_s29 = scalar_lea.hbm %s946_s4, %s604_s19  ;;  %s423_s10 = scalar_lea.sflag [#allocation4], %s269_s9 }
  0x2d   : > { %vm414_vm3 = vcmp.ne.s32.totalorder %v385_v20, 4294967196  ;;  %s698_s13 = scalar_lea.vmem %s446_s20, 256  ;;  %s769_s14 = smov [#allocation5]  }
  0x2e   : > { %597 = vmatmul.mubr.msk.bf16.vlgmr.msra.gmra.mxu0 %vm338_vm0, %v301_v5  ;;  %v598_v36 = vsel %vm414_vm3, 1.0, %v768_v35  ;;  %p699_p6 = scmp.ne.s32.totalorder %s446_s20, %s698_s13  ;;  %s702_s15 = sshll.u32 %s769_s14, 4  ;;  %s703_s15 = int_to_ptr.vmem [resolvable:$false] %s702_s15 }
  0x2f   : > { %421 = vst.msk [vmem:[%s299_s18] sm:$0xff] %vm419_vm4, %v598_v36  ;;  %s704_s16 = scalar_lea.vmem %s703_s15, 512  ;;  %p705_p11 = scmp.lt.s32.totalorder %s446_s20, %s703_s15 }
  0x30   : > { %p700_p9 = pnand %p699_p6, %p843_p5  ;;  %p706_p12 = scmp.lt.s32.totalorder %s704_s16, %s698_s13 }
  0x32   : > { %p701_p10 = pneg %p700_p9  ;;  %p707_p13 = por %p706_p12, %p705_p11 }
  0x34   : > { %p708_p0 = pnand %p707_p13, %p701_p10 }
  0xee   : > { %v376_v13 = vpop.f32.mrf.mxu0 }
  0xef   : > { %v377_v14 = vadd.f32 %v376_v13, %v311_v11 }
  0xf0   : > { %v378_v15 = vpop.f32.mrf.mxu0 }
  0xf1   : > { %v379_v16 = vadd.f32 %v378_v15, %v315_v12  ;;  %383 = vst [vmem:[%s885_s11] sm:$0xff] %v377_v14 }
  0xf2   : > { %v380_v17 = vpop.f32.mrf.mxu0 }
  0xf3   : > { %v386_v18 = vmax.f32 %v377_v14, %v379_v16  ;;  %384 = vst [vmem:[%s885_s11 + $0x8] sm:$0xff] %v379_v16 }
  0xf4   : > { %v381_v19 = vpop.f32.mrf.mxu0 }
  0xf5   : > { %387 = vmax.xlane.f32.xlu0 %v386_v18 }
 0x10b   : > { %405 = vperm.xlu0 %659, %v385_v20  }
 0x17e   : > { %v388_v21 = vpop.xlane.xlu0 %387 }
 0x17f   : > { %v389_v22 = vsub.f32 %v377_v14, %v388_v21  ;;  %v390_v23 = vsub.f32 %v379_v16, %v388_v21 }
 0x181   : > { %v391_v24 = vmul.f32 1.442695, %v389_v22  ;;  %v393_v25 = vmul.f32 1.442695, %v390_v23 }
 0x183   : > { %666 = vpow2.f32 %v391_v24 }
 0x184   : > { %668 = vpow2.f32 %v393_v25 }
 0x186   : > { %v406_v28 = vpop.permute.xlu0 %405 }
 0x187   : > { %vm407_vm1 = vcmp.eq.s32.totalorder %v402_v26, %v406_v28  ;;  %vm408_vm2 = vcmp.eq.s32.totalorder %v403_v27, %v406_v28 }
 0x188   : > { %v409_v32 = vsel %vm407_vm1, %v377_v14, 0.0  ;;  %v410_v33 = vsel %vm408_vm2, %v379_v16, 0.0 }
 0x189   : > { %v411_v34 = vadd.f32 %v410_v33, %v409_v32 }
 0x190   : > { %v667_v29 = vpop.eup %666 }
 0x191   : > { %v669_v30 = vpop.eup %668 }
 0x192   : > { %v395_v31 = vadd.f32 %v669_v30, %v667_v29 }
 0x194   : > { %396 = vadd.xlane.f32.xlu1 %v395_v31 }
 0x198   : > { %412 = vadd.xlane.f32.xlu1 %v411_v34 }
 0x199   : > { %711 = shalt.err (!%p708_p0)
}
 0x19a   : > { %s712_s25 = scalar_lea.hbm %s443_s29, 256  ;;  %s716_s17 = scalar_lea.hbm %s946_s4, 512 }
 0x19b   : > { %p713_p1 = scmp.ne.s32.totalorder %s443_s29, %s712_s25  ;;  %p717_p4 = scmp.lt.s32.totalorder %s443_s29, %s946_s4 }
 0x19c   : > { %p718_p7 = scmp.lt.s32.totalorder %s716_s17, %s712_s25 }
 0x19d   : > { %p714_p2 = pnand %p713_p1, %p843_p5 }
 0x19e   : > { %p719_p8 = por %p718_p7, %p717_p4 }
 0x19f   : > { %p715_p3 = pneg %p714_p2 }
 0x1a1   : > { %p720_p6 = pnand %p719_p8, %p715_p3 }
 0x1a3   : > { %723 = shalt.err (!%p720_p6)
}
 0x1a4   : > { %609 = dma.vmem_to_hbm [thread:$0]  (%p843_p5), %s446_s20, 256, %s443_s29, %s423_s10  }
 0x1a5   : > { %s295_s13 = scalar_lea.vmem %s947_s5, %s890_s12 }
 0x21d   : > { %v397_v37 = vpop.xlane.xlu1 %396 }
 0x21e   : > { %670 = vlog2.f32 %v397_v37 }
 0x221   : > { %v413_v41 = vpop.xlane.xlu1 %412 }
 0x22b   : > { %v671_v38 = vpop.eup %670 }
 0x22c   : > { %v399_v39 = vmul.f32 0.6931472, %v671_v38 }
 0x22e   : > { %v400_v40 = vadd.f32 %v399_v39, %v388_v21 }
 0x230   : > { %v417_v42 = vsub.f32 %v400_v40, %v413_v41 }
 0x232   : > { %v418_v43 = vmul.f32 %v598_v36, %v417_v42 }
 0x234   : > { %420 = vst.msk [vmem:[%s295_s13] sm:$0xff] %vm419_vm4, %v418_v43 }
 0x235 PF: > { %p621_p9 = scmp.ge.s32.totalorder %s762_s24, 2  ;;  %s463_s7 = sand.u32 1, %s750_s21  }
 0x236   : > { %p952_p5 = scmp.ne.s32.totalorder %s950_s8, 0  ;;  %s464_s20 = scalar_lea.sflag [#allocation4], %s463_s7 }
 0x238   : > { %p616_p10 = pnand %p621_p9, %p952_p5 }
 0x23a   : > { %p617_p11 = pneg %p616_p10 }
 0x23c   : > { %745 = dma.done.wait (%p617_p11), %s464_s20, 256  }
 0x23d   : > { %747 = vsyncadd (%p617_p11), %s464_s20, 4294967040  ;;  %p18_p12 = scmp.ge.s32.totalorder %s830_s27, 4   ;;  %s953_s21 = smov %s754_s22 }
 0x23e   : > { %s954_s22 = smov %s758_s23  ;;  %s955_s23 = smov %s841_s30 }
 0x23f   : > { %s956_s24 = smov %s830_s27  ;;  %20 = sbr.rel (!%p18_p12) target bundleno = 4 (0x4), region = 103 }
 0x244   :  { %483 = vsyncpa [#allocation3], 1 }
 0x245   :  { %485 = vsyncpa [#allocation3 + $0x1], 1 }
 0x246   :  { %486 = vsyncpa [#allocation4], 1 }
 0x247   :  { %488 = vsyncpa [#allocation4 + $0x1], 1 }

</bundles_post_ra>
